<compile_context>
chip_gen: v7x
topology: tpu7x:2x2x1
jax: 0.10.0
libtpu: 0.0.40
codegen_flags: <defaults>
</compile_context>

<pallas_src>
import functools

import jax
import jax.numpy as jnp
import numpy as np
from jax.experimental import pallas as pl
from jax.experimental.pallas import tpu as pltpu

NPAD = 128  # lane-aligned padding of the batch dimension (single-tile kernel)


def _iqa_loss_kernel(x_ref, out_ref, d_ref, *, n):
    x = x_ref[...]                   # (8, NPAD) f32, one vreg
    yp = x[0:1, :]                   # (1, NPAD) predictions
    lbl = x[1:2, :]                  # (1, NPAD) labels        (y[:, 1])
    idx = x[2:3, :]                  # (1, NPAD) group indices (y[:, 0])

    # ---- smooth L1 elementwise (beta = 1.0); padded lanes contribute 0 -----
    d = yp - lbl
    ad = jnp.abs(d)
    sl1 = jnp.where(ad < 1.0, 0.5 * d * d, ad - 0.5)          # (1, NPAD)

    # ---- batched group membership: row k matches idx == (k+3)/10 -----------
    # (rows 6, 7 get targets 0.9 / 1.0 which are never used for the loss)
    targets = (jax.lax.broadcasted_iota(jnp.int32, (8, 1), 0)
               .astype(jnp.float32) + 3.0) / 10.0             # (8, 1)
    G = (idx == targets).astype(jnp.float32)                  # (8, NPAD)

    # Fold the smooth-L1 sum into spare sublane row 6 of the label-sum reduce.
    row = jax.lax.broadcasted_iota(jnp.int32, (8, NPAD), 0)
    A = jnp.where(row == 6, sl1, G * lbl)                     # (8, NPAD)
    B = G * yp                                                # (8, NPAD)

    cnt = jnp.sum(G, axis=-1, keepdims=True)                  # (8, 1) counts
    sums_a = jnp.sum(A, axis=-1, keepdims=True)               # (8, 1) lbl sums + sl1 sum (row 6)
    sums_b = jnp.sum(B, axis=-1, keepdims=True)               # (8, 1) pred sums

    # ---- per-group means (0 for empty groups), one vectorized reciprocal ---
    inv = 1.0 / jnp.maximum(cnt, 1.0)                         # (8, 1)
    nonempty = cnt > 0.0
    res = jnp.where(nonempty, sums_a * inv, 0.0)
    pred = jnp.where(nonempty, sums_b * inv, 0.0)
    dgap = res - pred                                         # (8, 1)

    # Stash per-group gaps (rows 0..5) and the raw smooth-L1 sum (row 6) so we
    # can read them back as scalars.
    row8 = jax.lax.broadcasted_iota(jnp.int32, (8, 1), 0)
    d_ref[...] = jnp.where(row8 == 6, sums_a, dgap)

    loss1 = d_ref[6, 0] / jnp.float32(n)                      # mean over static N

    dvals = [d_ref[k, 0] for k in range(6)]
    loss2 = jnp.float32(0.0)
    for i in range(5):
        for j in range(i + 1, 6):
            # |res_i - res_j - (pred_i - pred_j)| == |dgap_i - dgap_j|
            loss2 = loss2 + jnp.abs(dvals[i] - dvals[j])

    out_ref[0, 0] = loss1 + jnp.float32(0.067) * loss2 * jnp.float32(4.0)


@jax.jit
def iqa_loss(y_pred, y):
    """y_pred: (N,) f32 ; y: (N, 2) f32 with y[:,0]=group idx, y[:,1]=label."""
    n = y_pred.shape[0]
    assert n <= NPAD, "batch larger than single-tile kernel supports"
    # TODO(synk): for N > 128, grow the sublane axis with a 1-D 'arbitrary'
    # grid and (8,1) accumulators instead of widening NPAD.

    packed = jnp.stack(
        [y_pred.astype(jnp.float32),
         y[:, 1].astype(jnp.float32),
         y[:, 0].astype(jnp.float32)],
        axis=0)                                               # (3, n)
    packed = jnp.pad(packed, ((0, 5), (0, NPAD - n)))         # (8, NPAD)

    out = pl.pallas_call(
        functools.partial(_iqa_loss_kernel, n=n),
        out_shape=jax.ShapeDtypeStruct((1, 1), jnp.float32),
        in_specs=[pl.BlockSpec(memory_space=pltpu.MemorySpace.VMEM)],
        out_specs=pl.BlockSpec(memory_space=pltpu.MemorySpace.SMEM),
        scratch_shapes=[pltpu.VMEM((8, 1), jnp.float32)],
    )(packed)
    return out[0, 0]


def _reference_numpy(y_pred, y):
    """Pure NumPy re-implementation of the PyTorch forward (for checking)."""
    y_pred = np.asarray(y_pred, np.float32)
    y = np.asarray(y, np.float32)
    d = y_pred - y[:, 1]
    ad = np.abs(d)
    loss1 = np.mean(np.where(ad < 1.0, 0.5 * d * d, ad - 0.5))
    res = [0.0] * 6
    pred = [0.0] * 6
    for k in range(6):
        # Note: like the PyTorch module, grouping uses exact float equality.
        sel = y[:, 0] == np.float32((k + 3) / 10)
        if sel.any():
            res[k] = float(np.mean(y[sel, 1]))
            pred[k] = float(np.mean(y_pred[sel]))
    loss2 = 0.0
    for i in range(5):
        for j in range(i + 1, 6):
            loss2 += abs(res[i] - res[j] - (pred[i] - pred[j]))
    return np.float32(loss1 + 0.067 * loss2 * 4)


if __name__ == "__main__":
    key = jax.random.PRNGKey(0)
    k1, k2, k3 = jax.random.split(key, 3)

    N = 8  # small batch
    # group indices drawn from {0.3, 0.4, ..., 0.8} exactly as float32((k+3)/10)
    group_ids = jax.random.randint(k1, (N,), 0, 6)
    idx_vals = jnp.array([np.float32((k + 3) / 10) for k in range(6)],
                         jnp.float32)[group_ids]
    labels = jax.random.uniform(k2, (N,), jnp.float32)          # y[:, 1]
    y = jnp.stack([idx_vals, labels], axis=1)                   # (N, 2)
    y_pred = jax.random.uniform(k3, (N,), jnp.float32)          # (N,)

    loss = iqa_loss(y_pred, y)
    jax.block_until_ready(loss)

    ref = _reference_numpy(np.array(y_pred), np.array(y))
    np.testing.assert_allclose(np.array(loss), ref, rtol=1e-5, atol=1e-5)

    print("KERNEL_OK")
</pallas_src>

<mosaic_0001>
module attributes {stable_mosaic.version = 11 : i64} {
  func.func @_iqa_loss_kernel(%arg0: memref<8x128xf32, #tpu.memory_space<vmem>>, %arg1: memref<1x1xf32, #tpu.memory_space<smem>>, %arg2: memref<8x1xf32, #tpu.memory_space<vmem>>) attributes {dimension_semantics = [], scalar_prefetch = 0 : i64, scratch_operands = 1 : i64, tpu.core_type = #tpu.core_type<tc>} {
    %c0 = arith.constant 0 : index
    %c0_0 = arith.constant 0 : index
    %0 = vector.load %arg0[%c0, %c0_0] : memref<8x128xf32, #tpu.memory_space<vmem>>, vector<8x128xf32>
    %1 = vector.extract_strided_slice %0 {offsets = [0, 0], sizes = [1, 128], strides = [1, 1]} : vector<8x128xf32> to vector<1x128xf32>
    %2 = vector.extract_strided_slice %0 {offsets = [1, 0], sizes = [1, 128], strides = [1, 1]} : vector<8x128xf32> to vector<1x128xf32>
    %3 = vector.extract_strided_slice %0 {offsets = [2, 0], sizes = [1, 128], strides = [1, 1]} : vector<8x128xf32> to vector<1x128xf32>
    %4 = arith.subf %1, %2 : vector<1x128xf32>
    %5 = math.absf %4 : vector<1x128xf32>
    %cst = arith.constant 1.000000e+00 : f32
    %6 = vector.broadcast %cst : f32 to vector<1x128xf32>
    %7 = arith.cmpf olt, %5, %6 : vector<1x128xf32>
    %cst_1 = arith.constant 5.000000e-01 : f32
    %8 = vector.broadcast %cst_1 : f32 to vector<1x128xf32>
    %9 = arith.mulf %8, %4 : vector<1x128xf32>
    %10 = arith.mulf %9, %4 : vector<1x128xf32>
    %cst_2 = arith.constant 5.000000e-01 : f32
    %11 = vector.broadcast %cst_2 : f32 to vector<1x128xf32>
    %12 = arith.subf %5, %11 : vector<1x128xf32>
    %13 = arith.select %7, %10, %12 : vector<1x128xi1>, vector<1x128xf32>
    %14 = tpu.iota {dimensions = array<i32: 0>} : vector<8x1xi32>
    %15 = arith.sitofp %14 : vector<8x1xi32> to vector<8x1xf32>
    %cst_3 = arith.constant 3.000000e+00 : f32
    %16 = vector.broadcast %cst_3 : f32 to vector<8x1xf32>
    %17 = arith.addf %15, %16 : vector<8x1xf32>
    %cst_4 = arith.constant 1.000000e+01 : f32
    %18 = vector.broadcast %cst_4 : f32 to vector<8x1xf32>
    %19 = arith.divf %17, %18 : vector<8x1xf32>
    %20 = vector.broadcast %3 : vector<1x128xf32> to vector<8x128xf32>
    %21 = vector.broadcast %19 : vector<8x1xf32> to vector<8x128xf32>
    %22 = arith.cmpf oeq, %20, %21 : vector<8x128xf32>
    %23 = arith.extui %22 : vector<8x128xi1> to vector<8x128xi32>
    %24 = arith.sitofp %23 : vector<8x128xi32> to vector<8x128xf32>
    %25 = tpu.iota {dimensions = array<i32: 0>} : vector<8x128xi32>
    %c6_i32 = arith.constant 6 : i32
    %26 = vector.broadcast %c6_i32 : i32 to vector<8x128xi32>
    %27 = arith.cmpi eq, %25, %26 : vector<8x128xi32>
    %28 = vector.broadcast %2 : vector<1x128xf32> to vector<8x128xf32>
    %29 = arith.mulf %24, %28 : vector<8x128xf32>
    %30 = vector.shape_cast %13 : vector<1x128xf32> to vector<1x128xf32>
    %31 = vector.broadcast %30 : vector<1x128xf32> to vector<8x128xf32>
    %32 = arith.select %27, %31, %29 : vector<8x128xi1>, vector<8x128xf32>
    %33 = vector.broadcast %1 : vector<1x128xf32> to vector<8x128xf32>
    %34 = arith.mulf %24, %33 : vector<8x128xf32>
    %cst_5 = arith.constant dense<0.000000e+00> : vector<8xf32>
    %35 = vector.multi_reduction <add>, %24, %cst_5 [1] : vector<8x128xf32> to vector<8xf32>
    %36 = vector.shape_cast %35 : vector<8xf32> to vector<8x1xf32>
    %cst_6 = arith.constant dense<0.000000e+00> : vector<8xf32>
    %37 = vector.multi_reduction <add>, %32, %cst_6 [1] : vector<8x128xf32> to vector<8xf32>
    %38 = vector.shape_cast %37 : vector<8xf32> to vector<8x1xf32>
    %cst_7 = arith.constant dense<0.000000e+00> : vector<8xf32>
    %39 = vector.multi_reduction <add>, %34, %cst_7 [1] : vector<8x128xf32> to vector<8xf32>
    %40 = vector.shape_cast %39 : vector<8xf32> to vector<8x1xf32>
    %cst_8 = arith.constant 1.000000e+00 : f32
    %41 = vector.broadcast %cst_8 : f32 to vector<8x1xf32>
    %42 = arith.maximumf %36, %41 : vector<8x1xf32>
    %cst_9 = arith.constant 1.000000e+00 : f32
    %43 = vector.broadcast %cst_9 : f32 to vector<8x1xf32>
    %44 = arith.divf %43, %42 : vector<8x1xf32>
    %cst_10 = arith.constant 0.000000e+00 : f32
    %45 = vector.broadcast %cst_10 : f32 to vector<8x1xf32>
    %46 = arith.cmpf ogt, %36, %45 : vector<8x1xf32>
    %47 = arith.mulf %38, %44 : vector<8x1xf32>
    %cst_11 = arith.constant 0.000000e+00 : f32
    %48 = vector.broadcast %cst_11 : f32 to vector<8x1xf32>
    %49 = arith.select %46, %47, %48 : vector<8x1xi1>, vector<8x1xf32>
    %50 = arith.mulf %40, %44 : vector<8x1xf32>
    %cst_12 = arith.constant 0.000000e+00 : f32
    %51 = vector.broadcast %cst_12 : f32 to vector<8x1xf32>
    %52 = arith.select %46, %50, %51 : vector<8x1xi1>, vector<8x1xf32>
    %53 = arith.subf %49, %52 : vector<8x1xf32>
    %54 = tpu.iota {dimensions = array<i32: 0>} : vector<8x1xi32>
    %c6_i32_13 = arith.constant 6 : i32
    %55 = vector.broadcast %c6_i32_13 : i32 to vector<8x1xi32>
    %56 = arith.cmpi eq, %54, %55 : vector<8x1xi32>
    %57 = arith.select %56, %38, %53 : vector<8x1xi1>, vector<8x1xf32>
    %c0_14 = arith.constant 0 : index
    %c0_15 = arith.constant 0 : index
    %58 = vector.load %arg2[%c0_14, %c0_15] : memref<8x1xf32, #tpu.memory_space<vmem>>, vector<8x1xf32>
    tpu.vector_store %arg2[%c0_14, %c0_15], %57 {strides = array<i32>} : memref<8x1xf32, #tpu.memory_space<vmem>>, vector<8x1xf32>,
    %c6 = arith.constant 6 : index
    %c0_16 = arith.constant 0 : index
    %59 = vector.load %arg2[%c6, %c0_16] : memref<8x1xf32, #tpu.memory_space<vmem>>, vector<1x1xf32>
    %60 = vector.extract %59[0, 0] : f32 from vector<1x1xf32>
    %cst_17 = arith.constant 8.000000e+00 : f32
    %61 = arith.divf %60, %cst_17 : f32
    %c0_18 = arith.constant 0 : index
    %c0_19 = arith.constant 0 : index
    %62 = vector.load %arg2[%c0_18, %c0_19] : memref<8x1xf32, #tpu.memory_space<vmem>>, vector<1x1xf32>
    %63 = vector.extract %62[0, 0] : f32 from vector<1x1xf32>
    %c1 = arith.constant 1 : index
    %c0_20 = arith.constant 0 : index
    %64 = vector.load %arg2[%c1, %c0_20] : memref<8x1xf32, #tpu.memory_space<vmem>>, vector<1x1xf32>
    %65 = vector.extract %64[0, 0] : f32 from vector<1x1xf32>
    %c2 = arith.constant 2 : index
    %c0_21 = arith.constant 0 : index
    %66 = vector.load %arg2[%c2, %c0_21] : memref<8x1xf32, #tpu.memory_space<vmem>>, vector<1x1xf32>
    %67 = vector.extract %66[0, 0] : f32 from vector<1x1xf32>
    %c3 = arith.constant 3 : index
    %c0_22 = arith.constant 0 : index
    %68 = vector.load %arg2[%c3, %c0_22] : memref<8x1xf32, #tpu.memory_space<vmem>>, vector<1x1xf32>
    %69 = vector.extract %68[0, 0] : f32 from vector<1x1xf32>
    %c4 = arith.constant 4 : index
    %c0_23 = arith.constant 0 : index
    %70 = vector.load %arg2[%c4, %c0_23] : memref<8x1xf32, #tpu.memory_space<vmem>>, vector<1x1xf32>
    %71 = vector.extract %70[0, 0] : f32 from vector<1x1xf32>
    %c5 = arith.constant 5 : index
    %c0_24 = arith.constant 0 : index
    %72 = vector.load %arg2[%c5, %c0_24] : memref<8x1xf32, #tpu.memory_space<vmem>>, vector<1x1xf32>
    %73 = vector.extract %72[0, 0] : f32 from vector<1x1xf32>
    %74 = arith.subf %63, %65 : f32
    %75 = math.absf %74 : f32
    %cst_25 = arith.constant 0.000000e+00 : f32
    %76 = arith.addf %cst_25, %75 : f32
    %77 = arith.subf %63, %67 : f32
    %78 = math.absf %77 : f32
    %79 = arith.addf %76, %78 : f32
    %80 = arith.subf %63, %69 : f32
    %81 = math.absf %80 : f32
    %82 = arith.addf %79, %81 : f32
    %83 = arith.subf %63, %71 : f32
    %84 = math.absf %83 : f32
    %85 = arith.addf %82, %84 : f32
    %86 = arith.subf %63, %73 : f32
    %87 = math.absf %86 : f32
    %88 = arith.addf %85, %87 : f32
    %89 = arith.subf %65, %67 : f32
    %90 = math.absf %89 : f32
    %91 = arith.addf %88, %90 : f32
    %92 = arith.subf %65, %69 : f32
    %93 = math.absf %92 : f32
    %94 = arith.addf %91, %93 : f32
    %95 = arith.subf %65, %71 : f32
    %96 = math.absf %95 : f32
    %97 = arith.addf %94, %96 : f32
    %98 = arith.subf %65, %73 : f32
    %99 = math.absf %98 : f32
    %100 = arith.addf %97, %99 : f32
    %101 = arith.subf %67, %69 : f32
    %102 = math.absf %101 : f32
    %103 = arith.addf %100, %102 : f32
    %104 = arith.subf %67, %71 : f32
    %105 = math.absf %104 : f32
    %106 = arith.addf %103, %105 : f32
    %107 = arith.subf %67, %73 : f32
    %108 = math.absf %107 : f32
    %109 = arith.addf %106, %108 : f32
    %110 = arith.subf %69, %71 : f32
    %111 = math.absf %110 : f32
    %112 = arith.addf %109, %111 : f32
    %113 = arith.subf %69, %73 : f32
    %114 = math.absf %113 : f32
    %115 = arith.addf %112, %114 : f32
    %116 = arith.subf %71, %73 : f32
    %117 = math.absf %116 : f32
    %118 = arith.addf %115, %117 : f32
    %cst_26 = arith.constant 6.700000e-02 : f32
    %119 = arith.mulf %cst_26, %118 : f32
    %cst_27 = arith.constant 4.000000e+00 : f32
    %120 = arith.mulf %119, %cst_27 : f32
    %121 = arith.addf %61, %120 : f32
    %c0_28 = arith.constant 0 : index
    %c0_29 = arith.constant 0 : index
    %122 = memref.load %arg1[%c0_28, %c0_29] : memref<1x1xf32, #tpu.memory_space<smem>>
    memref.store %121, %arg1[%c0_28, %c0_29] : memref<1x1xf32, #tpu.memory_space<smem>>
    return
  }
}

</mosaic_0001>

<bundles_post_ra>
// kernel: iqa_loss.1
= control target key start
LH: loop header
LB: loop body
LE: loop exit
PB: predicated region body
PF: predicated region fallthrough
CT: control target
= control target key end

     0   :  { %v20_v1 = vlaneseq  ;;  %s246_s0 = inlined_call_operand.vmem [shape: f32[8,128], index: 0, kind: input, shape index: {}]   ;;  %s247_s1 = inlined_call_operand.hbm [shape: f32[1,1], index: 1, kind: output, shape index: {}]  }
   0x1   :  { %v9_v0 = vld [vmem:[%s246_s0] sm:$0xff] }
   0x2   :  { %6 = vsyncpa [#allocation4], 0  ;;  %v11_v2 = vrot.slane %v9_v0, 1  ;;  %v21_v3 = vshrl.u32 %v20_v1, 7  ;;  %v179_v20 = vmov 0.0   ;;  %vm65_vm4 = vcmask 7168  }
   0x4   :  { %v13_v4 = vsub.f32 %v9_v0, %v11_v2  ;;  %v22_v5 = vcvt.s32.f32 %v21_v3  ;;  %v28_v6 = vsub.s32 2, %v21_v3  ;;  %v36_v7 = vsub.s32 1, %v21_v3 }
   0x5   :  { %v41_v8 = vsub.s32 0, %v21_v3  ;;  %vm33_vm2 = vcmp.eq.s32.totalorder %v21_v3, 6 }
   0x6   :  { %v14_v9 = vand.u32 2147483647, %v13_v4  ;;  %v16_v10 = vmul.f32 0.5, %v13_v4  ;;  %v23_v11 = vadd.f32 3.0, %v22_v5  ;;  %v29_v12 = vrot.slane %v9_v0, %v28_v6 }
   0x7   :  { %v37_v16 = vrot.slane %v9_v0, %v36_v7  ;;  %v47_v17 = vrot.slane %v9_v0, %v41_v8 }
   0x8   :  { %vm15_vm0 = vcmp.lt.f32.partialorder %v14_v9, 1.0  ;;  %v17_v13 = vmul.f32 %v16_v10, %v13_v4  ;;  %v147_v14 = vadd.f32 -0.5, %v14_v9  ;;  %v25_v15 = vmul.f32 0.1, %v23_v11 }
   0xa   :  { %v19_v18 = vsel %vm15_vm0, %v17_v13, %v147_v14  ;;  %vm30_vm1 = vcmp.eq.f32.partialorder %v29_v12, %v25_v15 }
   0xb   :  { %v42_v19 = vrot.slane %v19_v18, %v41_v8  ;;  %v148_v21 = vsel %vm30_vm1, 1.0, %v179_v20 }
   0xc   :  { %49 = vadd.xlane.f32.xlu0 %v148_v21  ;;  %v38_v22 = vmul.f32 %v148_v21, %v37_v16  ;;  %v48_v23 = vmul.f32 %v148_v21, %v47_v17 }
   0xe   :  { %53 = vadd.xlane.f32.xlu1 %v48_v23  ;;  %v43_v24 = vsel %vm33_vm2, %v42_v19, %v38_v22 }
  0x10   :  { %51 = vadd.xlane.f32.xlu0 %v43_v24 }
  0x99   :  { %v50_v25 = vpop.xlane.xlu0 %49 }
  0x9a   :  { %v55_v26 = vmax.f32 %v50_v25, 1.0  ;;  %vm58_vm3 = vcmp.gt.f32.partialorder %v50_v25, 0.0 }
  0x9b   :  { %v54_v27 = vpop.xlane.xlu1 %53 }
  0x9c   :  { %165 = vrcp.f32 %v55_v26 }
  0x9d   :  { %v52_v28 = vpop.xlane.xlu0 %51 }
  0xa6   :  { %v166_v29 = vpop.eup %165 }
  0xa7   :  { %v61_v30 = vmul.f32 %v166_v29, %v54_v27  ;;  %v59_v31 = vmul.f32 %v166_v29, %v52_v28 }
  0xa9   :  { %v62_v32 = vsel %vm58_vm3, %v61_v30, 0.0  ;;  %v60_v33 = vsel %vm58_vm3, %v59_v31, 0.0 }
  0xaa   :  { %v63_v34 = vsub.f32 %v60_v33, %v62_v32 }
  0xac   :  { %v64_v35 = vsel %vm33_vm2, %v52_v28, %v63_v34 }
  0xad   :  { %66 = vst.msk [vmem:[#allocation2] sm:$0xff] %vm65_vm4, %v64_v35 }
  0xb4   :  { %v67_v36 = vld [vmem:[#allocation2 + $0x6] sm:$0x1]  ;;  %v72_v37 = vld [vmem:[#allocation2] sm:$0x1]  ;;  %v74_v38 = vld [vmem:[#allocation2 + $0x1] sm:$0x1] }
  0xb5   :  { %149 = vpush %v67_v36  ;;  %v76_v39 = vld [vmem:[#allocation2 + $0x2] sm:$0x1]  ;;  %v78_v40 = vld [vmem:[#allocation2 + $0x3] sm:$0x1]  ;;  %v80_v41 = vld [vmem:[#allocation2 + $0x4] sm:$0x1] }
  0xb6   :  { %151 = vpush %v72_v37  ;;  %v82_v42 = vld [vmem:[#allocation2 + $0x5] sm:$0x1] }
  0xb7   :  { %153 = vpush %v74_v38 }
  0xb8   :  { %155 = vpush %v76_v39 }
  0xb9   :  { %157 = vpush %v78_v40 }
  0xba   :  { %159 = vpush %v80_v41 }
  0xbb   :  { %161 = vpush %v82_v42 }
  0xe6   :  { %s196_s0 = spop %149 }
  0xe7   :  { %s152_s8 = spop %151 }
  0xe8   :  { %s198_s9 = spop %153 }
  0xe9   :  { %s84_s10 = ssub.f32 %s152_s8, %s198_s9  ;;  %s201_s11 = spop %155 }
  0xea   :  { %s87_s12 = ssub.f32 %s152_s8, %s201_s11  ;;  %s204_s13 = spop %157 }
  0xeb   :  { %s85_s14 = sand.u32 2147483647, %s84_s10  ;;  %s90_s16 = ssub.f32 %s152_s8, %s204_s13 }
  0xec   :  { %s88_s15 = sand.u32 2147483647, %s87_s12  ;;  %s207_s19 = spop %159 }
  0xed   :  { %s89_s17 = sadd.f32 %s88_s15, %s85_s14  ;;  %s91_s18 = sand.u32 2147483647, %s90_s16 }
  0xee   :  { %s93_s21 = ssub.f32 %s152_s8, %s207_s19  ;;  %s210_s22 = spop %161 }
  0xef   :  { %s92_s20 = sadd.f32 %s91_s18, %s89_s17 }
  0xf0   :  { %s99_s23 = ssub.f32 %s198_s9, %s201_s11  ;;  %s94_s24 = sand.u32 2147483647, %s93_s21 }
  0xf1   :  { %s95_s25 = sadd.f32 %s94_s24, %s92_s20 }
  0xf2   :  { %s96_s26 = ssub.f32 %s152_s8, %s210_s22  ;;  %s100_s30 = sand.u32 2147483647, %s99_s23 }
  0xf3   :  { %s102_s27 = ssub.f32 %s198_s9, %s204_s13 }
  0xf4   :  { %s97_s28 = sand.u32 2147483647, %s96_s26  ;;  %s105_s2 = ssub.f32 %s198_s9, %s207_s19 }
  0xf5   :  { %s98_s29 = sadd.f32 %s97_s28, %s95_s25  ;;  %s103_s4 = sand.u32 2147483647, %s102_s27 }
  0xf6   :  { %s108_s5 = ssub.f32 %s198_s9, %s210_s22  ;;  %s106_s10 = sand.u32 2147483647, %s105_s2 }
  0xf7   :  { %s101_s3 = sadd.f32 %s100_s30, %s98_s29 }
  0xf8   :  { %s111_s7 = ssub.f32 %s201_s11, %s204_s13  ;;  %s109_s14 = sand.u32 2147483647, %s108_s5 }
  0xf9   :  { %s104_s6 = sadd.f32 %s103_s4, %s101_s3  ;;  %s71_s5 = smul.f32 0.125, %s196_s0 }
  0xfa   :  { %s114_s12 = ssub.f32 %s201_s11, %s207_s19  ;;  %s112_s16 = sand.u32 2147483647, %s111_s7 }
  0xfb   :  { %s107_s8 = sadd.f32 %s106_s10, %s104_s6 }
  0xfc   :  { %s117_s17 = ssub.f32 %s201_s11, %s210_s22  ;;  %s115_s20 = sand.u32 2147483647, %s114_s12 }
  0xfd   :  { %s110_s15 = sadd.f32 %s109_s14, %s107_s8  ;;  %s167_s8 = scalar_lea.hbm %s247_s1, 16 }
  0xfe   :  { %s120_s21 = ssub.f32 %s204_s13, %s207_s19  ;;  %s118_s24 = sand.u32 2147483647, %s117_s17 }
  0xff   :  { %s113_s18 = sadd.f32 %s112_s16, %s110_s15  ;;  %p168_p0 = scmp.ne.s32.totalorder %s247_s1, %s167_s8 }
 0x100   :  { %s123_s25 = ssub.f32 %s204_s13, %s210_s22  ;;  %s121_s9 = sand.u32 2147483647, %s120_s21 }
 0x101   :  { %s116_s23 = sadd.f32 %s115_s20, %s113_s18  ;;  %p171_p1 = scmp.lt.u32.totalorder %s167_s8, %s247_s1 }
 0x102   :  { %s126_s27 = ssub.f32 %s207_s19, %s210_s22  ;;  %s124_s29 = sand.u32 2147483647, %s123_s25 }
 0x103   :  { %s119_s26 = sadd.f32 %s118_s24, %s116_s23  ;;  %p173_p2 = pnand %p171_p1, %p168_p0 }
 0x104   :  { %s127_s2 = sand.u32 2147483647, %s126_s27 }
 0x105   :  { %s122_s28 = sadd.f32 %s121_s9, %s119_s26 }
 0x107   :  { %s125_s30 = sadd.f32 %s124_s29, %s122_s28 }
 0x109   :  { %s128_s3 = sadd.f32 %s127_s2, %s125_s30 }
 0x10b   :  { %s129_s4 = smul.f32 0.067, %s128_s3 }
 0x10d   :  { %s130_s6 = smul.f32 4.0, %s129_s4 }
 0x10f   :  { %s131_s7 = sadd.f32 %s130_s6, %s71_s5 }
 0x111   :  { %133 = sst [smem:[#allocation3]] %s131_s7 }
 0x112   :  { %176 = shalt.err (!%p173_p2)
}
 0x113   :  { %s180_s22 = smov [#allocation3]  }
 0x114   :  { %141 = dma.smem_to_hbm %s180_s22, 16, %s247_s1, [#allocation4]  }
 0x115   :  { %177 = dma.done.wait [#allocation4], 16  }
 0x116   :  { %178 = vsyncadd [#allocation4], 4294967280 }
 0x117   :  { %145 = sfence }
 0x118   :  { %146 = vsyncpa [#allocation4], 1 }

</bundles_post_ra>
